<compile_context>
chip_gen: v5e
topology: v5e:2x2
jax: 0.10.0
libtpu: 0.0.40
codegen_flags: <defaults>
</compile_context>

<pallas_src>
import jax
import jax.numpy as jnp
from jax.experimental import pallas as pl
from jax.experimental.pallas import tpu as pltpu


def _round_up(x, m):
    return (x + m - 1) // m * m


def complex_linear_kernel(x_ref, w_ref, b_ref, out_ref):
    # x_ref:   [bm, 2*In]     = [xr | xi]
    # w_ref:   [2*In, 2*Out]  = [[w_re, w_im], [-w_im, w_re]]
    # b_ref:   [1, 2*Out]     = [b_re - b_im | b_re + b_im]
    # out_ref: [bm, 2*Out]    = [real | imag]
    acc = jnp.dot(x_ref[...], w_ref[...], preferred_element_type=jnp.float32)
    out_ref[...] = (acc + b_ref[...]).astype(out_ref.dtype)


def prepare_complex_linear_params(w_re, w_im, b_re, b_im, *, compute_dtype=None):
    """One-time param fusion (hoisted out of the per-call forward path)."""
    In, Out = w_re.shape
    Out_p = _round_up(Out, 64)  # 2*Out_p is a multiple of 128 -> unmasked stores
    if Out_p != Out:
        pad2 = ((0, 0), (0, Out_p - Out))
        w_re = jnp.pad(w_re, pad2)
        w_im = jnp.pad(w_im, pad2)
        b_re = jnp.pad(b_re, (0, Out_p - Out))
        b_im = jnp.pad(b_im, (0, Out_p - Out))
    top = jnp.concatenate([w_re, w_im], axis=1)        # [In,   2*Out_p]
    bot = jnp.concatenate([-w_im, w_re], axis=1)       # [In,   2*Out_p]
    w2 = jnp.concatenate([top, bot], axis=0)           # [2*In, 2*Out_p]
    bcat = jnp.concatenate([b_re - b_im, b_re + b_im]).reshape(1, 2 * Out_p)
    if compute_dtype is not None:
        w2 = w2.astype(compute_dtype)                  # e.g. bf16 on v6e/v7x
    return w2, bcat.astype(jnp.float32), Out


def complex_linear_apply(x, w2, bcat, out_features, *, bm=None, compute_dtype=None):
    """x: [B, 2, In]; w2: [2*In, 2*Out_p]; bcat: [1, 2*Out_p] -> [B, 2, Out]."""
    B, two, In = x.shape
    assert two == 2
    two_out_p = w2.shape[1]
    Out_p = two_out_p // 2
    Out = out_features
    out_dtype = x.dtype

    # Free row-major flatten of the (real, imag) planes: row = [xr | xi].
    x2 = x.reshape(B, 2 * In)
    if compute_dtype is not None:
        x2 = x2.astype(compute_dtype)

    # Tile only the batch axis; the fused weight/bias stay resident across it.
    if bm is None:
        bm = B if B <= 512 else 512
    bm = min(bm, B)
    if bm != B:
        bm = max(8, _round_up(bm, 8))
    B_p = _round_up(B, bm)
    if B_p != B:
        x2 = jnp.pad(x2, ((0, B_p - B), (0, 0)))
    grid = (B_p // bm,)

    x_item = jnp.dtype(x2.dtype).itemsize
    w_item = jnp.dtype(w2.dtype).itemsize
    o_item = jnp.dtype(out_dtype).itemsize

    flops = 2 * B_p * (2 * In) * two_out_p
    bytes_accessed = (x2.size * x_item + w2.size * w_item
                      + bcat.size * 4 + B_p * two_out_p * o_item)

    # Double-buffered x/out tiles + resident fused weight (+ headroom); only
    # raise the scoped VMEM limit when the default would be tight.
    vmem_est = (2 * bm * 2 * In * x_item
                + 2 * bm * two_out_p * o_item
                + 2 * w2.size * w_item
                + 2 * bcat.size * 4
                + (1 << 20))
    cp_kwargs = dict(dimension_semantics=("parallel",))
    if vmem_est > (16 << 20):
        cp_kwargs["vmem_limit_bytes"] = int(vmem_est * 1.25)

    out2 = pl.pallas_call(
        complex_linear_kernel,
        out_shape=jax.ShapeDtypeStruct((B_p, two_out_p), out_dtype),
        grid_spec=pltpu.PrefetchScalarGridSpec(
            num_scalar_prefetch=0,
            grid=grid,
            in_specs=[
                # Lane-dense 2-D x tile over the batch axis.
                pl.BlockSpec((bm, 2 * In), lambda i: (i, 0)),
                # Grid-invariant fused weight / folded bias (stay resident).
                pl.BlockSpec((2 * In, two_out_p), lambda i: (0, 0)),
                pl.BlockSpec((1, two_out_p), lambda i: (0, 0)),
            ],
            out_specs=pl.BlockSpec((bm, two_out_p), lambda i: (i, 0)),
        ),
        compiler_params=pltpu.CompilerParams(**cp_kwargs),
        cost_estimate=pl.CostEstimate(
            flops=flops, transcendentals=0, bytes_accessed=bytes_accessed),
    )(x2, w2, bcat)

    out2 = out2[:B]
    if Out_p == Out:
        # Free row-major split of the fused (real | imag) slab.
        return out2.reshape(B, 2, Out)
    real = out2[:, :Out]
    imag = out2[:, Out_p:Out_p + Out]
    return jnp.stack((real, imag), axis=1)


def complex_linear(x, w_re, w_im, b_re, b_im, *, bm=None, compute_dtype=None):
    """Convenience path (fuses params per call; prefer prepare_* + apply)."""
    w2, bcat, out_features = prepare_complex_linear_params(
        w_re, w_im, b_re, b_im, compute_dtype=compute_dtype)
    return complex_linear_apply(x, w2, bcat, out_features,
                                bm=bm, compute_dtype=compute_dtype)


def reference(x, w_re, w_im, b_re, b_im):
    x_re, x_im = x[:, 0, :], x[:, 1, :]
    lr = lambda v: v @ w_re + b_re
    li = lambda v: v @ w_im + b_im
    real = lr(x_re) - li(x_im)
    imag = lr(x_im) + li(x_re)
    return jnp.stack((real, imag), axis=1)


if __name__ == "__main__":
    key = jax.random.PRNGKey(0)
    # Small but lane-friendly: 2*In = 2*Out = 128 -> fully lane-dense tiles.
    B, In, Out = 16, 64, 64

    k_x, k_wr, k_wi, k_br, k_bi = jax.random.split(key, 5)

    # Deterministic init mimicking nn.Linear default: U(-1/sqrt(In), 1/sqrt(In)).
    bound = 1.0 / jnp.sqrt(jnp.float32(In))
    w_re = jax.random.uniform(k_wr, (In, Out), jnp.float32, -bound, bound)
    w_im = jax.random.uniform(k_wi, (In, Out), jnp.float32, -bound, bound)
    b_re = jax.random.uniform(k_br, (Out,), jnp.float32, -bound, bound)
    b_im = jax.random.uniform(k_bi, (Out,), jnp.float32, -bound, bound)

    x = jax.random.normal(k_x, (B, 2, In), jnp.float32)

    # One-time param fusion (as a real model would do), then apply.
    w2, bcat, out_features = prepare_complex_linear_params(w_re, w_im, b_re, b_im)
    out = complex_linear_apply(x, w2, bcat, out_features)  # bm=B -> grid=(1,)
    out = jax.block_until_ready(out)

    ref = reference(x, w_re, w_im, b_re, b_im)
    assert out.shape == (B, 2, Out), out.shape
    err = float(jnp.max(jnp.abs(out - ref)))
    assert jnp.allclose(out, ref, atol=1e-4, rtol=1e-4), err

    print("KERNEL_OK")
</pallas_src>

<mosaic_0001>
module attributes {stable_mosaic.version = 11 : i64} {
  func.func @complex_linear_kernel(%arg0: i32, %arg1: memref<16x128xf32, #tpu.memory_space<vmem>>, %arg2: memref<128x128xf32, #tpu.memory_space<vmem>>, %arg3: memref<1x128xf32, #tpu.memory_space<vmem>>, %arg4: memref<16x128xf32, #tpu.memory_space<vmem>>) attributes {dimension_semantics = [#tpu.dimension_semantics<parallel>], iteration_bounds = array<i64: 1>, scalar_prefetch = 0 : i64, scratch_operands = 0 : i64, tpu.core_type = #tpu.core_type<tc>, window_params = [{transform_indices = @transform_0, window_bounds = array<i64: 16, 128>}, {pipeline_mode = #tpu.pipeline_mode<synchronous>, transform_indices = @transform_1, window_bounds = array<i64: 128, 128>}, {pipeline_mode = #tpu.pipeline_mode<synchronous>, transform_indices = @transform_2, window_bounds = array<i64: 1, 128>}, {transform_indices = @transform_3, window_bounds = array<i64: 16, 128>}]} {
    %c0 = arith.constant 0 : index
    %c0_0 = arith.constant 0 : index
    %0 = vector.load %arg1[%c0, %c0_0] : memref<16x128xf32, #tpu.memory_space<vmem>>, vector<16x128xf32>
    %c0_1 = arith.constant 0 : index
    %c0_2 = arith.constant 0 : index
    %1 = vector.load %arg2[%c0_1, %c0_2] : memref<128x128xf32, #tpu.memory_space<vmem>>, vector<128x128xf32>
    %cst = arith.constant dense<0.000000e+00> : vector<16x128xf32>
    %2 = tpu.matmul %0, %1, %cst {dimension_numbers = #tpu.dot_dimension_numbers<[1], [0], [0], [1], [0, 0, 1, 1], [], []>} : vector<16x128xf32>, vector<128x128xf32>, vector<16x128xf32> -> vector<16x128xf32>
    %c0_3 = arith.constant 0 : index
    %c0_4 = arith.constant 0 : index
    %3 = vector.load %arg3[%c0_3, %c0_4] : memref<1x128xf32, #tpu.memory_space<vmem>>, vector<1x128xf32>
    %4 = vector.broadcast %3 : vector<1x128xf32> to vector<16x128xf32>
    %5 = arith.addf %2, %4 : vector<16x128xf32>
    %c0_5 = arith.constant 0 : index
    %c0_6 = arith.constant 0 : index
    %6 = vector.load %arg4[%c0_5, %c0_6] : memref<16x128xf32, #tpu.memory_space<vmem>>, vector<16x128xf32>
    tpu.vector_store %arg4[%c0_5, %c0_6], %5 {strides = array<i32>} : memref<16x128xf32, #tpu.memory_space<vmem>>, vector<16x128xf32>,
    return
  }
  func.func @transform_0(%arg0: i32) -> (i32, i32) {
    %c0_i32 = arith.constant 0 : i32
    %c0_i32_0 = arith.constant 0 : i32
    return %arg0, %c0_i32 : i32, i32
  }
  func.func @transform_1(%arg0: i32) -> (i32, i32) {
    %c0_i32 = arith.constant 0 : i32
    %c0_i32_0 = arith.constant 0 : i32
    %c0_i32_1 = arith.constant 0 : i32
    return %c0_i32, %c0_i32_0 : i32, i32
  }
  func.func @transform_2(%arg0: i32) -> (i32, i32) {
    %c0_i32 = arith.constant 0 : i32
    %c0_i32_0 = arith.constant 0 : i32
    %c0_i32_1 = arith.constant 0 : i32
    return %c0_i32, %c0_i32_0 : i32, i32
  }
  func.func @transform_3(%arg0: i32) -> (i32, i32) {
    %c0_i32 = arith.constant 0 : i32
    %c0_i32_0 = arith.constant 0 : i32
    return %arg0, %c0_i32 : i32, i32
  }
}

</mosaic_0001>

<bundles_post_ra>
// kernel: tpu_custom_call.1
= control target key start
LH: loop header
LB: loop body
LE: loop exit
PB: predicated region body
PF: predicated region fallthrough
CT: control target
= control target key end

     0   :  { %8 = vsyncpa [#allocation3], 0  ;;  %s260_s0 = inlined_call_operand.hbm [shape: f32[16,128], index: 0, kind: input, shape index: {}]   ;;  %s261_s1 = inlined_call_operand.hbm [shape: f32[128,128], index: 1, kind: input, shape index: {}]   ;;  %s262_s2 = inlined_call_operand.vmem [shape: f32[1,128], index: 2, kind: input, shape index: {}]   ;;  %s263_s3 = inlined_call_operand.hbm [shape: f32[16,128], index: 3, kind: output, shape index: {}]  }
   0x1   :  { %9 = vsyncpa [#allocation6], 0 }
   0x2   :  { %10 = vsyncpa [#allocation4], 0  ;;  %s15_s14 = sshll.u32 %s260_s0, 4  ;;  %s214_s15 = smov [#allocation2]   ;;  %s16_s14 = int_to_ptr.hbm [resolvable:$true] %s15_s14 }
   0x3   :  { %s17_s16 = sshll.u32 %s214_s15, 4  ;;  %s28_s19 = sshll.u32 %s261_s1, 4  ;;  %s18_s16 = int_to_ptr.vmem [resolvable:$true] %s17_s16  ;;  %s29_s19 = int_to_ptr.hbm [resolvable:$true] %s28_s19 }
   0x4   :  { %s215_s20 = smov 128   ;;  %s216_s21 = smov 8  }
   0x5   :  { %23 = dma.hbm_to_vmem [thread:$0]  %s16_s14, 256, %s18_s16, [#allocation3], %s215_s20, %s215_s20, %s216_s21  }
   0x6   :  { %s217_s22 = smov [#allocation5]  }
   0x7   :  { %s30_s23 = sshll.u32 %s217_s22, 4  ;;  %s31_s23 = int_to_ptr.vmem [resolvable:$true] %s30_s23 }
   0x8   :  { %36 = dma.hbm_to_vmem [thread:$0]  %s29_s19, 2048, %s31_s23, [#allocation6], %s215_s20, %s215_s20, %s216_s21  }
   0x9   :  { %208 = dma.done.wait [#allocation3], 256  }
   0xa   :  { %209 = vsyncadd [#allocation3], 4294967040 }
   0xb   :  { %210 = dma.done.wait [#allocation6], 2048  }
   0xc   :  { %211 = vsyncadd [#allocation6], 4294965248  ;;  %v64_v0 = vld [vmem:[#allocation5 + $0x78] sm:$0xff]  ;;  %v63_v1 = vld [vmem:[#allocation5 + $0x70] sm:$0xff]  ;;  %s218_s24 = smov [#allocation7]   ;;  %s100_s28 = sshll.u32 %s263_s3, 4  ;;  %s101_s28 = int_to_ptr.hbm [resolvable:$true] %s100_s28 }
   0xd   :  { %69 = vmatpush.msra.mxu0 %v64_v0  ;;  %114 = vmatpush.msra.mxu1 %v64_v0  ;;  %v62_v2 = vld [vmem:[#allocation5 + $0x68] sm:$0xff]  ;;  %v61_v3 = vld [vmem:[#allocation5 + $0x60] sm:$0xff]  ;;  %v60_v4 = vld [vmem:[#allocation5 + $0x58] sm:$0xff]  ;;  %s98_s25 = sshll.u32 %s218_s24, 4  ;;  %s99_s25 = int_to_ptr.vmem [resolvable:$true] %s98_s25 }
   0xe   :  { %v59_v5 = vld [vmem:[#allocation5 + $0x50] sm:$0xff]  ;;  %v58_v6 = vld [vmem:[#allocation5 + $0x48] sm:$0xff]  ;;  %v57_v7 = vld [vmem:[#allocation5 + $0x40] sm:$0xff] }
   0xf   :  { %70 = vmatpush.msra.mxu0 %v63_v1  ;;  %115 = vmatpush.msra.mxu1 %v63_v1  ;;  %v56_v8 = vld [vmem:[#allocation5 + $0x38] sm:$0xff]  ;;  %v55_v9 = vld [vmem:[#allocation5 + $0x30] sm:$0xff]  ;;  %v54_v10 = vld [vmem:[#allocation5 + $0x28] sm:$0xff] }
  0x10   :  { %v53_v11 = vld [vmem:[#allocation5 + $0x20] sm:$0xff]  ;;  %v52_v12 = vld [vmem:[#allocation5 + $0x18] sm:$0xff]  ;;  %v51_v13 = vld [vmem:[#allocation5 + $0x10] sm:$0xff] }
  0x11   :  { %71 = vmatpush.msra.mxu0 %v62_v2  ;;  %116 = vmatpush.msra.mxu1 %v62_v2  ;;  %v50_v14 = vld [vmem:[#allocation5 + $0x8] sm:$0xff]  ;;  %v49_v15 = vld [vmem:[#allocation5] sm:$0xff]  ;;  %v47_v16 = vld [vmem:[#allocation2] sm:$0xff] }
  0x12   :  { %v48_v17 = vld [vmem:[#allocation2 + $0x8] sm:$0xff]  ;;  %v135_v18 = vld [vmem:[%s262_s2] ss:$0 sm:$0xff] }
  0x13   :  { %72 = vmatpush.msra.mxu0 %v61_v3  ;;  %117 = vmatpush.msra.mxu1 %v61_v3 }
  0x15   :  { %73 = vmatpush.msra.mxu0 %v60_v4  ;;  %118 = vmatpush.msra.mxu1 %v60_v4 }
  0x17   :  { %74 = vmatpush.msra.mxu0 %v59_v5  ;;  %119 = vmatpush.msra.mxu1 %v59_v5 }
  0x19   :  { %75 = vmatpush.msra.mxu0 %v58_v6  ;;  %120 = vmatpush.msra.mxu1 %v58_v6 }
  0x1b   :  { %76 = vmatpush.msra.mxu0 %v57_v7  ;;  %121 = vmatpush.msra.mxu1 %v57_v7 }
  0x1d   :  { %77 = vmatpush.msra.mxu0 %v56_v8  ;;  %122 = vmatpush.msra.mxu1 %v56_v8 }
  0x1f   :  { %78 = vmatpush.msra.mxu0 %v55_v9  ;;  %123 = vmatpush.msra.mxu1 %v55_v9 }
  0x21   :  { %79 = vmatpush.msra.mxu0 %v54_v10  ;;  %124 = vmatpush.msra.mxu1 %v54_v10 }
  0x23   :  { %80 = vmatpush.msra.mxu0 %v53_v11  ;;  %125 = vmatpush.msra.mxu1 %v53_v11 }
  0x25   :  { %81 = vmatpush.msra.mxu0 %v52_v12  ;;  %126 = vmatpush.msra.mxu1 %v52_v12 }
  0x27   :  { %82 = vmatpush.msra.mxu0 %v51_v13  ;;  %127 = vmatpush.msra.mxu1 %v51_v13 }
  0x29   :  { %83 = vmatpush.msra.mxu0 %v50_v14  ;;  %128 = vmatpush.msra.mxu1 %v50_v14 }
  0x2b   :  { %84 = vmatpush.msra.mxu0 %v49_v15  ;;  %129 = vmatpush.msra.mxu1 %v49_v15 }
  0x2c   :  { %85 = vmatmul.f32.vlgmr.msra.gmra.mxu0 %v47_v16  ;;  %88 = vmatmul.f32.vlgmr.msra.gmra.mxu1 %v48_v17 }
  0xa9   :  { %v86_v19 = vpop.f32.mrf.mxu0  ;;  %v89_v20 = vpop.f32.mrf.mxu1 }
  0xaa   :  { %v87_v21 = vadd.f32 %v135_v18, %v86_v19  ;;  %v90_v22 = vadd.f32 %v135_v18, %v89_v20 }
  0xac   :  { %92 = vst [vmem:[#allocation7] sm:$0xff] %v87_v21 }
  0xad   :  { %93 = vst [vmem:[#allocation7 + $0x8] sm:$0xff] %v90_v22 }
  0xae   :  { %106 = dma.vmem_to_hbm [thread:$0]  %s99_s25, 256, %s101_s28, [#allocation4], %s215_s20, %s215_s20, %s216_s21  }
  0xaf   :  { %212 = dma.done.wait [#allocation4], 256  }
  0xb0   :  { %213 = vsyncadd [#allocation4], 4294967040 }
  0xb1   :  { %111 = vsyncpa [#allocation3], 1 }
  0xb2   :  { %112 = vsyncpa [#allocation6], 1 }
  0xb3   :  { %113 = vsyncpa [#allocation4], 1 }

</bundles_post_ra>
